<compile_context>
chip_gen: v5e
topology: v5e:2x2
jax: 0.10.0
libtpu: 0.0.40
codegen_flags: <defaults>
</compile_context>

<pallas_src>
import jax
import jax.numpy as jnp
from jax.experimental import pallas as pl
from jax.experimental.pallas import tpu as pltpu


def _copy_kernel(x_ref, o_ref):
    # Pure vld/vst identity pass: no reshape, no relayout, no XLU/VALU work.
    o_ref[...] = x_ref[...]


# Per-block VMEM budget.  Input + output, each double-buffered, is ~4x this.
_TILE_BYTES = 2 * 1024 * 1024


def _round_up(a, b):
    return (a + b - 1) // b * b


def _block_shape(n, flat, itemsize):
    """Fixed, VMEM-bounded (bn, bf) block for an (n, flat) identity copy."""
    pack = max(1, 4 // itemsize)          # 32-bit packing factor (1 / 2 / 4)
    sub, lane = 8 * pack, 128             # dtype-aware sublane alignment

    # Lane (last) dim: largest 128-multiple such that one `sub`-row strip fits
    # the budget; full extent if the array is narrower (full extent is legal
    # even when not a multiple of 128).
    max_bf = max(lane, (_TILE_BYTES // (sub * itemsize)) // lane * lane)
    bf = flat if flat <= max_bf else max_bf

    # Sublane dim: fill the remaining budget with `sub`-aligned rows; full
    # extent when the batch is small.
    bf_pad = _round_up(bf, lane)
    max_bn = max(sub, (_TILE_BYTES // (bf_pad * itemsize)) // sub * sub)
    bn = n if n <= max_bn else max_bn
    return bn, bf


@jax.jit
def flatten(x):
    """Pallas equivalent of torch Flatten: (N, ...) -> (N, prod(...))."""
    n = x.shape[0]
    flat = 1
    for d in x.shape[1:]:
        flat *= d

    # The actual flatten: metadata-only reshape, done in the wrapper so the
    # kernel never reshapes across (8, 128) tile boundaries.
    x2 = x.reshape(n, flat)

    itemsize = jnp.dtype(x.dtype).itemsize
    bn, bf = _block_shape(n, flat, itemsize)
    grid = (pl.cdiv(n, bn), pl.cdiv(flat, bf))

    return pl.pallas_call(
        _copy_kernel,
        out_shape=jax.ShapeDtypeStruct((n, flat), x.dtype),
        grid_spec=pltpu.PrefetchScalarGridSpec(
            num_scalar_prefetch=0,
            grid=grid,
            in_specs=[pl.BlockSpec((bn, bf), lambda i, j: (i, j))],
            out_specs=pl.BlockSpec((bn, bf), lambda i, j: (i, j)),
        ),
        # Donate the freshly-reshaped input buffer to the output: the copy
        # becomes in-place whenever XLA can alias it.
        input_output_aliases={0: 0},
        # Purely memory-bound, zero compute: let XLA overlap it with
        # neighbouring compute-bound ops.
        cost_estimate=pl.CostEstimate(
            flops=0,
            transcendentals=0,
            bytes_accessed=2 * n * flat * itemsize,
        ),
        compiler_params=pltpu.CompilerParams(
            # Both axes independent -> blocks shard across v7x's 2 TensorCores.
            dimension_semantics=("parallel", "parallel"),
        ),
    )(x2)


if __name__ == "__main__":
    key = jax.random.PRNGKey(0)
    # Small NCHW input consistent with the module's intended post-conv use.
    x = jax.random.normal(key, (2, 4, 16, 16), dtype=jnp.float32)

    out = jax.block_until_ready(flatten(x))

    # Reference: plain JAX reshape (same semantics as torch .view(N, -1)).
    ref = x.reshape(x.shape[0], -1)
    assert out.shape == (2, 4 * 16 * 16), out.shape
    assert out.dtype == x.dtype
    assert jnp.array_equal(out, ref), "Pallas flatten mismatch vs reference"

    print("KERNEL_OK")
</pallas_src>

<mosaic_0001>
module attributes {stable_mosaic.version = 11 : i64} {
  func.func @_copy_kernel(%arg0: i32, %arg1: i32, %arg2: memref<2x1024xf32, #tpu.memory_space<vmem>>, %arg3: memref<2x1024xf32, #tpu.memory_space<vmem>>) attributes {dimension_semantics = [#tpu.dimension_semantics<parallel>, #tpu.dimension_semantics<parallel>], iteration_bounds = array<i64: 1, 1>, scalar_prefetch = 0 : i64, scratch_operands = 0 : i64, tpu.core_type = #tpu.core_type<tc>, window_params = [{transform_indices = @transform_0, window_bounds = array<i64: 2, 1024>}, {transform_indices = @transform_1, window_bounds = array<i64: 2, 1024>}]} {
    %c0 = arith.constant 0 : index
    %c0_0 = arith.constant 0 : index
    %0 = vector.load %arg2[%c0, %c0_0] : memref<2x1024xf32, #tpu.memory_space<vmem>>, vector<2x1024xf32>
    %c0_1 = arith.constant 0 : index
    %c0_2 = arith.constant 0 : index
    %1 = vector.load %arg3[%c0_1, %c0_2] : memref<2x1024xf32, #tpu.memory_space<vmem>>, vector<2x1024xf32>
    tpu.vector_store %arg3[%c0_1, %c0_2], %0 {strides = array<i32>} : memref<2x1024xf32, #tpu.memory_space<vmem>>, vector<2x1024xf32>,
    return
  }
  func.func @transform_0(%arg0: i32, %arg1: i32) -> (i32, i32) {
    %c0_i32 = arith.constant 0 : i32
    return %arg0, %arg1 : i32, i32
  }
  func.func @transform_1(%arg0: i32, %arg1: i32) -> (i32, i32) {
    %c0_i32 = arith.constant 0 : i32
    return %arg0, %arg1 : i32, i32
  }
}

</mosaic_0001>

<bundles_post_ra>
// kernel: flatten.1
= control target key start
LH: loop header
LB: loop body
LE: loop exit
PB: predicated region body
PF: predicated region fallthrough
CT: control target
= control target key end

     0   :  { %6 = vsyncpa [#allocation3], 0  ;;  %s116_s0 = inlined_call_operand.hbm [shape: f32[2,1024], index: 0, kind: input, shape index: {}, may-alias: {0,1}]   ;;  %s117_s1 = inlined_call_operand.hbm [shape: f32[2,1024], index: 1, kind: output, shape index: {}, may-alias: {0,1}]  }
   0x1   :  { %7 = vsyncpa [#allocation4], 0  ;;  %s13_s8 = sshll.u32 %s116_s0, 4  ;;  %s98_s9 = smov [#allocation2]   ;;  %s14_s8 = int_to_ptr.hbm [resolvable:$true] %s13_s8 }
   0x2   :  { %s15_s10 = sshll.u32 %s98_s9, 4  ;;  %s16_s10 = int_to_ptr.vmem [resolvable:$true] %s15_s10 }
   0x3   :  { %18 = dma.hbm_to_vmem [thread:$0]  %s14_s8, 256, %s16_s10, [#allocation3]  }
   0x4   :  { %94 = dma.done.wait [#allocation3], 256  }
   0x5   :  { %95 = vsyncadd [#allocation3], 4294967040  ;;  %s99_s11 = smov [#allocation5]   ;;  %s34_s15 = sshll.u32 %s117_s1, 4  ;;  %v23_v0 = vld [vmem:[#allocation2] sm:$0xff]  ;;  %v24_v1 = vld [vmem:[#allocation2 + $0x8] sm:$0xff]  ;;  %s35_s15 = int_to_ptr.hbm [resolvable:$true] %s34_s15 }
   0x6   :  { %s32_s12 = sshll.u32 %s99_s11, 4  ;;  %25 = vst [vmem:[#allocation5] sm:$0xff] %v23_v0  ;;  %s33_s12 = int_to_ptr.vmem [resolvable:$true] %s32_s12 }
   0x7   :  { %26 = vst [vmem:[#allocation5 + $0x8] sm:$0xff] %v24_v1 }
   0x8   :  { %37 = dma.vmem_to_hbm [thread:$0]  %s33_s12, 256, %s35_s15, [#allocation4]  }
   0x9   :  { %96 = dma.done.wait [#allocation4], 256  }
   0xa   :  { %97 = vsyncadd [#allocation4], 4294967040 }
   0xb   :  { %42 = vsyncpa [#allocation3], 1 }
   0xc   :  { %43 = vsyncpa [#allocation4], 1 }

</bundles_post_ra>
